<compile_context>
chip_gen: v5e
topology: v5e:2x2
jax: 0.10.0
libtpu: 0.0.40
codegen_flags: <defaults>
</compile_context>

<pallas_src>
import jax
import jax.numpy as jnp
from jax.experimental import pallas as pl
from jax.experimental.pallas import tpu as pltpu

_LANES = 128


def _add_pos_kernel(x_ref, pos_ref, o_ref):
    # x_ref, pos_ref, o_ref: (TR, W) -- batch dim squeezed away, identical layouts.
    # Cast happens here (in-kernel, free VPU work), not in the wrapper.
    o_ref[...] = (x_ref[...] + pos_ref[...]).astype(o_ref.dtype)


def _vmem_capacity_bytes():
    """Per-core VMEM capacity; conservative (v7x = 64 MiB) fallback if introspection fails."""
    try:
        cap = getattr(pltpu.get_tpu_info(), "vmem_capacity_bytes", None)
        if cap:
            return int(cap)
    except Exception:
        pass
    return 64 * 1024 * 1024


def positional_container_forward(input_embeddings, pos_weight, tile_rows=None):
    """input_embeddings: [B, S, H]; pos_weight: [max_positions, H].

    Equivalent to the PyTorch module:
        position_ids = arange(S)
        return input_embeddings + embedding(position_ids)[None, :, :]
    """
    B, S, H = input_embeddings.shape
    max_positions, Hw = pos_weight.shape
    if Hw != H:
        raise ValueError(f"hidden-size mismatch: x has H={H}, pos table has H={Hw}")
    if max_positions < S:
        raise ValueError(f"sequence length {S} exceeds positional table size {max_positions}")

    # Output dtype follows type promotion (torch semantics): bf16 x + f32 table -> f32.
    out_dtype = jnp.promote_types(input_embeddings.dtype, pos_weight.dtype)
    x_item = jnp.dtype(input_embeddings.dtype).itemsize
    p_item = jnp.dtype(pos_weight.dtype).itemsize
    o_item = jnp.dtype(out_dtype).itemsize
    # Sublane packing requirement across all operands: f32 -> 8 rows/vreg, bf16 -> 16, int8 -> 32.
    sublane = max(8, 32 // min(x_item, p_item, o_item))

    vmem_cap = _vmem_capacity_bytes()
    # ~5-6 MiB blocks on v7x (64 MiB VMEM), up to 8 MiB on v5e/v6e (128 MiB VMEM).
    target_block_bytes = min(8 << 20, max(4 << 20, vmem_cap // 12))

    if (H % _LANES == 0) or ((S * H) % _LANES != 0):
        # --- 3-D path: tile (S, H) directly. Full pos_weight passed in (no wrapper slice/cast);
        # the same BlockSpec block index selects rows [s*tr, s*tr+tr) of the table.
        # (If H is not a multiple of 128 AND S*H isn't either, this is also the fallback path;
        #  stores are then masked vst.msk -- correct, just slower.)
        x_in = input_embeddings
        pos_in = pos_weight
        rows, width = S, H
    else:
        # --- Lane-dense slab path: H not a multiple of 128 but S*H is. Present a (rows, 128)
        # slab so output stores are unmasked vst. Reshapes of x/out are free (contiguous view);
        # only the (small, S*H) pos slice is materialized since the flattened layout needs
        # exactly the first S rows of the table.
        rows, width = (S * H) // _LANES, _LANES
        x_in = input_embeddings.reshape(B, rows, width)
        pos_in = jax.lax.slice(pos_weight, (0, 0), (S, H)).reshape(rows, width)

    # Guard against shapes where even a minimal (sublane, width) block can't fit the pipeline.
    if 6 * sublane * width * max(x_item, p_item, o_item) > vmem_cap:
        # TODO(synk): add a width-tiling (third grid axis) fallback for extreme H.
        raise ValueError(f"H={H} too large for a full-width block on this TPU generation")

    # ---- Tile selection (row tiles of ~target_block_bytes, sublane-aligned). ----
    if tile_rows is not None:
        tr = int(tile_rows)
    else:
        tr = max(1, target_block_bytes // max(1, width * max(x_item, o_item)))
    tr = min(tr, max(rows, 1))
    tr = ((tr + sublane - 1) // sublane) * sublane  # (8,128) rule for all operands/dtypes
    num_tiles = pl.cdiv(rows, tr)

    # v7x has 2 TensorCores per chip: make sure both get work when the shape allows it.
    while num_tiles * B < 2 and tr > sublane:
        tr = max(sublane, ((tr // 2 + sublane - 1) // sublane) * sublane)
        num_tiles = pl.cdiv(rows, tr)

    # ---- VMEM limit: actual need (2 buffers x {x, out, pos}) plus headroom, capped below cap.
    needed = 2 * tr * width * (x_item + o_item + p_item)
    vmem_limit = int(min(vmem_cap * 7 // 8, max(needed + (8 << 20), 32 << 20)))

    out = pl.pallas_call(
        _add_pos_kernel,
        out_shape=jax.ShapeDtypeStruct((B, rows, width), out_dtype),
        # Row-tile axis OUTER, batch innermost -> pos block index constant across consecutive
        # grid steps, so its DMA is issued once per row-tile instead of once per (tile, b).
        grid=(num_tiles, B),
        in_specs=[
            pl.BlockSpec((pl.Squeezed(), tr, width), lambda s, b: (b, s, 0)),
            pl.BlockSpec((tr, width), lambda s, b: (s, 0)),
        ],
        out_specs=pl.BlockSpec((pl.Squeezed(), tr, width), lambda s, b: (b, s, 0)),
        compiler_params=pltpu.CompilerParams(
            dimension_semantics=("parallel", "parallel"),
            vmem_limit_bytes=vmem_limit,
        ),
    )(x_in, pos_in)

    return out.reshape(B, S, H)


if __name__ == "__main__":
    key = jax.random.PRNGKey(0)
    k_x, k_w, k_x2, k_w2 = jax.random.split(key, 4)

    # ---- Small shape consistent with the module (H=32 -> lane-dense slab path) ----
    B, S, H = 2, 8, 32
    MAX_POSITIONS = 16
    pos_weight = jax.random.normal(k_w, (MAX_POSITIONS, H), dtype=jnp.float32)
    input_embeddings = jax.random.normal(k_x, (B, S, H), dtype=jnp.float32)

    out = jax.block_until_ready(positional_container_forward(input_embeddings, pos_weight))
    ref = input_embeddings + pos_weight[jnp.arange(S)][None, :, :]
    assert out.shape == (B, S, H) and out.dtype == ref.dtype
    assert jnp.allclose(out, ref, atol=1e-6), "mismatch vs reference (small / slab path)"

    # ---- H multiple of 128 -> 3-D path, whole table passed in, partial last S-tile ----
    B2, S2, H2 = 2, 40, 128
    MAX_POS2 = 64
    pos_weight2 = jax.random.normal(k_w2, (MAX_POS2, H2), dtype=jnp.float32)
    input_embeddings2 = jax.random.normal(k_x2, (B2, S2, H2), dtype=jnp.float32)

    out2 = jax.block_until_ready(
        positional_container_forward(input_embeddings2, pos_weight2, tile_rows=16)
    )
    ref2 = input_embeddings2 + pos_weight2[jnp.arange(S2)][None, :, :]
    assert out2.shape == (B2, S2, H2)
    assert jnp.allclose(out2, ref2, atol=1e-6), "mismatch vs reference (tiled / 3-D path)"

    # ---- Mixed dtypes: bf16 activations + f32 table promotes to f32 (torch semantics) ----
    x_bf16 = input_embeddings.astype(jnp.bfloat16)
    out3 = jax.block_until_ready(positional_container_forward(x_bf16, pos_weight))
    ref3 = x_bf16 + pos_weight[jnp.arange(S)][None, :, :]
    assert out3.dtype == jnp.float32
    assert jnp.allclose(out3, ref3, atol=1e-6), "mismatch vs reference (dtype promotion)"

    print("KERNEL_OK")
</pallas_src>

<mosaic_0001>
module attributes {stable_mosaic.version = 11 : i64} {
  func.func @_add_pos_kernel(%arg0: i32, %arg1: i32, %arg2: memref<1x8x128xf32, #tpu.memory_space<vmem>>, %arg3: memref<8x128xf32, #tpu.memory_space<vmem>>, %arg4: memref<1x8x128xf32, #tpu.memory_space<vmem>>) attributes {dimension_semantics = [#tpu.dimension_semantics<parallel>, #tpu.dimension_semantics<parallel>], iteration_bounds = array<i64: 1, 2>, scalar_prefetch = 0 : i64, scratch_operands = 0 : i64, tpu.core_type = #tpu.core_type<tc>, window_params = [{transform_indices = @transform_0, window_bounds = array<i64: 1, 8, 128>}, {transform_indices = @transform_1, window_bounds = array<i64: 8, 128>}, {transform_indices = @transform_2, window_bounds = array<i64: 1, 8, 128>}]} {
    %c0 = arith.constant 0 : index
    %c0_0 = arith.constant 0 : index
    %c0_1 = arith.constant 0 : index
    %0 = vector.load %arg2[%c0, %c0_0, %c0_1] : memref<1x8x128xf32, #tpu.memory_space<vmem>>, vector<1x8x128xf32>
    %1 = vector.shape_cast %0 : vector<1x8x128xf32> to vector<8x128xf32>
    %c0_2 = arith.constant 0 : index
    %c0_3 = arith.constant 0 : index
    %2 = vector.load %arg3[%c0_2, %c0_3] : memref<8x128xf32, #tpu.memory_space<vmem>>, vector<8x128xf32>
    %3 = arith.addf %1, %2 : vector<8x128xf32>
    %c0_4 = arith.constant 0 : index
    %c0_5 = arith.constant 0 : index
    %c0_6 = arith.constant 0 : index
    %4 = vector.load %arg4[%c0_4, %c0_5, %c0_6] : memref<1x8x128xf32, #tpu.memory_space<vmem>>, vector<1x8x128xf32>
    %5 = vector.shape_cast %4 : vector<1x8x128xf32> to vector<8x128xf32>
    %6 = vector.shape_cast %3 : vector<8x128xf32> to vector<1x8x128xf32>
    tpu.vector_store %arg4[%c0_4, %c0_5, %c0_6], %6 {strides = array<i32>} : memref<1x8x128xf32, #tpu.memory_space<vmem>>, vector<1x8x128xf32>,
    return
  }
  func.func @transform_0(%arg0: i32, %arg1: i32) -> (i32, i32, i32) {
    %c0_i32 = arith.constant 0 : i32
    %c0_i32_0 = arith.constant 0 : i32
    return %arg1, %arg0, %c0_i32 : i32, i32, i32
  }
  func.func @transform_1(%arg0: i32, %arg1: i32) -> (i32, i32) {
    %c0_i32 = arith.constant 0 : i32
    %c0_i32_0 = arith.constant 0 : i32
    return %arg0, %c0_i32 : i32, i32
  }
  func.func @transform_2(%arg0: i32, %arg1: i32) -> (i32, i32, i32) {
    %c0_i32 = arith.constant 0 : i32
    %c0_i32_0 = arith.constant 0 : i32
    return %arg1, %arg0, %c0_i32 : i32, i32, i32
  }
}

</mosaic_0001>

<bundles_post_ra>
// kernel: tpu_custom_call.1
= control target key start
LH: loop header
LB: loop body
LE: loop exit
PB: predicated region body
PF: predicated region fallthrough
CT: control target
= control target key end

     0   :  { %7 = vsyncpa [#allocation3], 0  ;;  %s723_s0 = inlined_call_operand.hbm [shape: f32[2,2,128], index: 0, kind: input, shape index: {}]   ;;  %s724_s1 = inlined_call_operand.hbm [shape: f32[2,128], index: 1, kind: input, shape index: {}]   ;;  %s725_s2 = inlined_call_operand.hbm [shape: f32[2,2,128], index: 2, kind: output, shape index: {}]  }
   0x1   :  { %9 = vsyncpa [#allocation3 + $0x1], 0 }
   0x2   :  { %10 = vsyncpa [#allocation6], 0 }
   0x3   :  { %11 = vsyncpa [#allocation4], 0 }
   0x4   :  { %13 = vsyncpa [#allocation4 + $0x1], 0  ;;  %s582_s9 = smov 0   ;;  %s584_s10 = smov 0  }
   0x5   :  { %s586_s11 = smov 0   ;;  %s588_s12 = smov 0  }
   0x6   :  { %s590_s13 = smov 0   ;;  %s592_s14 = smov 0  }
   0x7 LB: > { %s613_s15 = sadd.s32 4294967295, %s558_s14   ;;  %s349_s16 = sadd.s32 4294967294, %s558_s14   ;;  %s558_s14 = sphi %s592_s14, %s19_s14   ;;  %s554_s13 = sphi %s590_s13, %s735_s13   ;;  %s550_s12 = sphi %s588_s12, %s734_s12   ;;  %s546_s11 = sphi %s586_s11, %s733_s11   ;;  %s542_s10 = sphi %s584_s10, %s732_s10   ;;  %s538_s9 = sphi %s582_s9, %s731_s9  }
   0x8   : > { %s28_s17 = sadd.s32 1, %s554_s13  ;;  %s40_s18 = sadd.s32 1, %s546_s11 }
   0x9   : > { %p29_p0 = scmp.ge.s32.totalorder %s28_s17, 2  ;;  %p47_p1 = scmp.ne.s32.totalorder %s546_s11, %s542_s10 }
   0xa   : > { %p48_p2 = scmp.eq.s32.totalorder %s558_s14, 0  ;;  %p53_p3 = scmp.ne.s32.totalorder %s542_s10, %s538_s9 }
   0xb   : > { %s737_s17 = smov (%p29_p0, %s28_s17), 0  ;;  %p54_p5 = scmp.eq.s32.totalorder %s613_s15, 0 }
   0xc   : > { %p625_p4 = por %p48_p2, %p47_p1  ;;  %s35_s20 = ssub.s32 %s554_s13, %s737_s17 }
   0xd   : > { %p105_p6 = scmp.eq.s32.totalorder %s613_s15, 1  ;;  %p38_p7 = scmp.eq.s32.totalorder %s35_s20, 0 }
   0xe   : > { %p635_p8 = por %p54_p5, %p53_p3  ;;  %p111_p10 = scmp.eq.s32.totalorder %s349_s16, 1 }
   0xf   : > { %p639_p9 = por %p105_p6, %p47_p1  ;;  %p350_p12 = scmp.ge.s32.totalorder %s558_s14, 1 }
  0x10   : > { %s644_s23 = scalar_select %p38_p7, %s546_s11, %s40_s18  }
  0x11   : > { %p646_p11 = por %p111_p10, %p53_p3  ;;  %p118_p13 = scmp.lt.s32.totalorder %s558_s14, 3 }
  0x13   : > { %p652_p0 = pnand %p350_p12, %p118_p13 }
  0x14   : > { %p351_p1 = scmp.ne.s32.totalorder (!%p652_p0), %s613_s15, 0 }
  0x15   : > { %122 = sbr.rel (%p652_p0) target bundleno = 35 (0x23), region = 12 }
  0x1a   : > { %126 = sbr.rel (%p351_p1) target bundleno = 35 (0x23), region = 16 }
  0x1f   : > { %132 = vsyncadd [#allocation6], 96  ;;  %s137_s28 = sshll.u32 %s724_s1, 4  ;;  %s560_s29 = smov [#allocation5]   ;;  %s138_s28 = int_to_ptr.hbm [resolvable:$true] %s137_s28 }
  0x20   : > { %s139_s30 = sshll.u32 %s560_s29, 4  ;;  %s561_s3 = smov 32   ;;  %s140_s30 = int_to_ptr.vmem [resolvable:$true] %s139_s30 }
  0x21   : > { %s562_s4 = smov 2  }
  0x22   : > { %145 = dma.hbm_to_vmem [thread:$0]  %s138_s28, 32, %s140_s30, [#allocation6], %s561_s3, %s561_s3, %s562_s4  }
  0x23 PF: > { %p352_p2 = scmp.ge.s32.totalorder %s558_s14, 2 }
  0x25   : > { %149 = sbr.rel (%p352_p2) target bundleno = 51 (0x33), region = 20 }
  0x2a   : > { %152 = sbr.rel (!%p625_p4) target bundleno = 51 (0x33), region = 24  ;;  %s153_s5 = sand.u32 (%p625_p4), 1, %s546_s11  }
  0x2b   : > { %s353_s6 = sshll.u32 (%p625_p4), %s153_s5, 3  ;;  %s154_s7 = scalar_lea.sflag (%p625_p4), [#allocation3], %s153_s5 }
  0x2c   : > { %s157_s8 = scalar_lea.vmem (%p625_p4), [#allocation2], %s353_s6 }
  0x2f   : > { %163 = vsyncadd %s154_s7, 96  ;;  %s354_s16 = sshll.u32 %s554_s13, 1  ;;  %s171_s18 = sshll.u32 %s157_s8, 4  ;;  %s172_s18 = int_to_ptr.vmem [resolvable:$true] %s171_s18 }
  0x30   : > { %s167_s27 = scalar_lea.hbm %s723_s0, %s354_s16  ;;  %s563_s29 = smov 32  }
  0x31   : > { %s169_s28 = sshll.u32 %s167_s27, 4  ;;  %s564_s30 = smov 2   ;;  %s170_s28 = int_to_ptr.hbm [resolvable:$true] %s169_s28 }
  0x32   : > { %177 = dma.hbm_to_vmem [thread:$0]  %s170_s28, 32, %s172_s18, %s154_s7, %s563_s29, %s563_s29, %s564_s30  }
  0x33 PF: > { %183 = sbr.rel (%p652_p0) target bundleno = 79 (0x4f), region = 28  ;;  %s675_s19 = sand.u32 (!%p652_p0), 1, %s542_s10  }
  0x34   : > { %s356_s3 = sshll.u32 (!%p652_p0), %s675_s19, 3  ;;  %s186_s4 = scalar_lea.sflag (!%p652_p0), [#allocation3], %s675_s19 }
  0x35   : > { %s189_s5 = scalar_lea.vmem (!%p652_p0), [#allocation2], %s356_s3 }
  0x38   : > { %525 = dma.done.wait (%p635_p8), %s186_s4, 128  }
  0x39   : > { %527 = vsyncadd (%p635_p8), %s186_s4, 4294967168 }
  0x3a   : > { %529 = dma.done.wait (%p54_p5), [#allocation6], 128  }
  0x3b   : > { %531 = vsyncadd (%p54_p5), [#allocation6], 4294967168  ;;  %v225_v0 = vld [vmem:[%s189_s5] sm:$0xff]  ;;  %v226_v1 = vld [vmem:[#allocation5] sm:$0xff]  ;;  %s215_s25 = scalar_lea.vmem [#allocation7], %s356_s3  ;;  %s230_s6 = scalar_lea.sflag [#allocation4], %s675_s19 }
  0x3c   : > { %v227_v2 = vadd.f32 %v226_v1, %v225_v0  ;;  %236 = sbr.rel (!%p639_p9) target bundleno = 79 (0x4f), region = 40 }
  0x3e   : > { %228 = vst [vmem:[%s215_s25] sm:$0xff] %v227_v2 }
  0x41   : > { %242 = vsyncadd %s230_s6, 96  ;;  %s360_s21 = sshll.u32 %s550_s12, 1  ;;  %s248_s7 = sshll.u32 %s215_s25, 4  ;;  %s249_s7 = int_to_ptr.vmem [resolvable:$true] %s248_s7 }
  0x42   : > { %s246_s18 = scalar_lea.hbm %s725_s2, %s360_s21  ;;  %s492_s22 = scalar_lea.hbm %s725_s2, 4 }
  0x43   : > { %s250_s15 = sshll.u32 %s246_s18, 4  ;;  %s251_s15 = int_to_ptr.hbm [resolvable:$true] %s250_s15 }
  0x44   : > { %s488_s20 = sshra.s32 %s251_s15, 4  ;;  %s489_s20 = int_to_ptr.hbm [resolvable:$true] %s488_s20 }
  0x45   : > { %s490_s26 = scalar_lea.hbm %s489_s20, 2  ;;  %p493_p4 = scmp.lt.s32.totalorder %s489_s20, %s725_s2 }
  0x46   : > { %p491_p3 = scmp.ne.s32.totalorder %s489_s20, %s490_s26  ;;  %p494_p5 = scmp.lt.s32.totalorder %s492_s22, %s490_s26 }
  0x48   : > { %p495_p6 = por %p494_p5, %p493_p4 }
  0x4a   : > { %p496_p7 = pnand %p495_p6, %p491_p3 }
  0x4c   : > { %499 = shalt.err (!%p496_p7)
}
  0x4d   : > { %s565_s12 = smov 32   ;;  %s566_s19 = smov 2  }
  0x4e   : > { %256 = dma.vmem_to_hbm [thread:$0]  %s249_s7, 32, %s251_s15, %s230_s6, %s565_s12, %s565_s12, %s566_s19  }
  0x4f PF: > { %s265_s3 = sand.u32 1, %s538_s9   ;;  %p368_p8 = pnand %p352_p2, %p646_p11 }
  0x50   : > { %s266_s4 = scalar_lea.sflag [#allocation4], %s265_s3 }
  0x51   : > { %p369_p9 = pneg %p368_p8 }
  0x53   : > { %533 = dma.done.wait (%p369_p9), %s266_s4, 128  }
  0x54   : > { %535 = vsyncadd (%p369_p9), %s266_s4, 4294967168  ;;  %s19_s14 = sadd.s32 1, %s558_s14   ;;  %s731_s9 = smov %s542_s10 }
  0x55   : > { %p16_p10 = scmp.ge.s32.totalorder %s19_s14, 4   ;;  %s732_s10 = smov %s546_s11 }
  0x56   : > { %s733_s11 = smov %s644_s23  ;;  %s734_s12 = smov %s554_s13 }
  0x57   : > { %s735_s13 = smov %s737_s17  ;;  %18 = sbr.rel (!%p16_p10) target bundleno = 7 (0x7), region = 78 }
  0x5c   :  { %272 = vsyncpa [#allocation3], 1 }
  0x5d   :  { %274 = vsyncpa [#allocation3 + $0x1], 1 }
  0x5e   :  { %275 = vsyncpa [#allocation6], 1 }
  0x5f   :  { %276 = vsyncpa [#allocation4], 1 }
  0x60   :  { %278 = vsyncpa [#allocation4 + $0x1], 1 }

</bundles_post_ra>
